<compile_context>
chip_gen: v7x
topology: tpu7x:2x2x1
jax: 0.10.0
libtpu: 0.0.40
codegen_flags: <defaults>
</compile_context>

<pallas_src>
import functools

import numpy as np
import jax
import jax.numpy as jnp
from jax.experimental import pallas as pl
from jax.experimental.pallas import tpu as pltpu

DROPOUT = 0.1
MAX_SEQ_LEN = 16384

_TARGET_TILE_BYTES = 8 * 1024 * 1024      # ~8 MiB input tile target (v7x roofline-friendly)
_XLA_FALLBACK_BYTES = 1 * 1024 * 1024     # below this, fused XLA beats a standalone pallas_call


def make_pe_table(d_model: int, max_len: int = MAX_SEQ_LEN, dtype=jnp.float32):
    """Deterministic sin/cos table, identical math to the torch __init__ (numpy glue)."""
    position = np.arange(max_len, dtype=np.float32)[:, None]                 # (max_len, 1)
    div_term = np.exp(np.arange(0, d_model, 2, dtype=np.float32)
                      * (-np.log(10000.0) / d_model))                        # (d_model//2,)
    pe = np.zeros((max_len, d_model), dtype=np.float32)
    pe[:, 0::2] = np.sin(position * div_term)
    pe[:, 1::2] = np.cos(position * div_term)
    return jnp.asarray(pe, dtype=dtype)                                      # (max_len, d_model)


# ----------------------------- kernels -------------------------------------

def pe_add_kernel(x_ref, pe_ref, o_ref):
    # x_ref: (TA, BD) tile, pe_ref: (1, BD); plain broadcast add in x.dtype.
    o_ref[...] = x_ref[...] + pe_ref[...]


def pe_add_dropout_prng_kernel(seed_ref, x_ref, pe_ref, o_ref, *, threshold, inv_keep):
    # On-chip PRNG path (real TPU). seed lives in SMEM; distinct stream per tile.
    pltpu.prng_seed(seed_ref[0] + pl.program_id(0))
    y = x_ref[...] + pe_ref[...]
    # TODO(synk): draw 8 random bits/element (uint8 threshold) instead of 32 so the
    # v7x training path stays HBM-bound; on v5e/v6e the 32-bit draw is already hidden.
    bits = pltpu.bitcast(pltpu.prng_random_bits(y.shape), jnp.uint32)
    keep = bits >= jnp.uint32(threshold)
    o_ref[...] = jnp.where(keep, y * jnp.asarray(inv_keep, y.dtype), jnp.zeros_like(y))


def pe_add_dropout_bits_kernel(x_ref, pe_ref, bits_ref, o_ref, *, threshold, inv_keep):
    # Fallback path (CPU / interpret): random uint32 bits supplied from the host.
    y = x_ref[...] + pe_ref[...]
    keep = bits_ref[...] >= jnp.uint32(threshold)
    o_ref[...] = jnp.where(keep, y * jnp.asarray(inv_keep, y.dtype), jnp.zeros_like(y))


# ----------------------------- planning --------------------------------------

def _round_up(v: int, m: int) -> int:
    return (v + m - 1) // m * m


def _vmem_limit_bytes() -> int:
    """Scoped-VMEM limit: ~2/3 of physical capacity, clamped to [20 MiB, 64 MiB]."""
    cap = 64 * 1024 * 1024                     # conservative default (v7x per-TC)
    try:
        cap = int(pltpu.get_tpu_info().vmem_capacity_bytes)
    except Exception:
        pass
    return int(min(max(cap * 2 // 3, 20 * 1024 * 1024), 64 * 1024 * 1024))


def _plan_rows(num_rows: int, bd: int, itemsize: int, training: bool, vmem_limit: int) -> int:
    """Rows per tile from the worst-path VMEM footprint, an ~8 MiB target, and a
    >=4-grid-step cap (v7x megacore)."""
    # Worst-path live bytes per tile row:
    #   2x double-buffered input + 2x double-buffered output + compute intermediate
    #   (+ uint32 random bits on the training path).
    per_row = bd * (5 * itemsize + (4 if training else 0))
    rows_fit = max(8, ((vmem_limit * 3 // 4) // max(per_row, 1)) // 8 * 8)
    rows_target = max(8, (_TARGET_TILE_BYTES // max(bd * itemsize, 1)) // 8 * 8)
    rows_split = max(8, _round_up(pl.cdiv(num_rows, 4), 8))   # >=4 grid steps when large
    ta = min(rows_fit, rows_target, rows_split)
    return num_rows if ta >= num_rows else int(ta)


# ----------------------------- wrapper --------------------------------------

def positional_encoding_forward(x, pe_table, *, dropout_p=DROPOUT, training=False,
                                seed=0, force_pallas=False):
    A, B, D = x.shape
    # Exact PyTorch broadcasting constraint: (A,B,D) + (1,A,D) requires B == A.
    assert B == A, "pe[:x.size(0)].transpose(0,1) broadcast requires x.shape[1] == x.shape[0]"

    p = float(dropout_p)
    apply_dropout = bool(training) and p > 0.0
    pe_slice = pe_table[:B].astype(x.dtype)                   # (B, D), compute in x.dtype

    if apply_dropout and p >= 1.0:
        # torch nn.Dropout(p=1.0) in training zeroes everything (avoid uint32 wrap).
        return jnp.zeros_like(x)

    # Tiny tensors: a standalone pallas_call (~µs fixed cost + its own HBM round trip)
    # loses to a fused XLA add; skip Pallas unless explicitly forced.
    if not force_pallas and x.size * x.dtype.itemsize < _XLA_FALLBACK_BYTES:
        y = x + pe_slice[None, :, :]
        if apply_dropout:
            keep = jax.random.bernoulli(jax.random.PRNGKey(seed), 1.0 - p, y.shape)
            y = jnp.where(keep, y / (1.0 - p), 0).astype(x.dtype)
        return y

    BD = B * D
    x2 = x.reshape(A, BD)
    pe2 = pe_slice.reshape(1, BD)

    # Lane-density guard: pad the folded last dim to a multiple of 128 so stores are
    # full-lane (unmasked vst), regardless of d_model / batch.
    BDp = _round_up(BD, 128)
    if BDp != BD:
        x2 = jnp.pad(x2, ((0, 0), (0, BDp - BD)))
        pe2 = jnp.pad(pe2, ((0, 0), (0, BDp - BD)))

    vmem_limit = _vmem_limit_bytes()
    ta = _plan_rows(A, BDp, x.dtype.itemsize, apply_dropout, vmem_limit)
    grid = (pl.cdiv(A, ta),)
    cparams = pltpu.CompilerParams(dimension_semantics=("parallel",),
                                   vmem_limit_bytes=vmem_limit)
    out_shape = jax.ShapeDtypeStruct((A, BDp), x.dtype)
    x_spec = pl.BlockSpec((ta, BDp), lambda i: (i, 0))
    pe_spec = pl.BlockSpec((1, BDp), lambda i: (0, 0))

    if not apply_dropout:
        out2 = pl.pallas_call(
            pe_add_kernel,
            out_shape=out_shape,
            grid=grid,
            in_specs=[x_spec, pe_spec],
            out_specs=x_spec,
            input_output_aliases={0: 0},        # in-place when the caller donates x
            compiler_params=cparams,
        )(x2, pe2)
    else:
        threshold = int(round(p * (2 ** 32)))   # drop with probability p (p < 1 guaranteed)
        inv_keep = 1.0 / (1.0 - p)
        if jax.default_backend() == "tpu":
            # Hardware PRNG: no extra HBM read for the dropout mask.
            # NOTE: vary `seed` per call or two calls will share dropout masks.
            seed_arr = jnp.asarray([seed], dtype=jnp.int32)
            out2 = pl.pallas_call(
                functools.partial(pe_add_dropout_prng_kernel,
                                  threshold=threshold, inv_keep=inv_keep),
                out_shape=out_shape,
                grid=grid,
                in_specs=[pl.BlockSpec(memory_space=pltpu.MemorySpace.SMEM),  # seed
                          x_spec, pe_spec],
                out_specs=x_spec,
                input_output_aliases={1: 0},    # operand 0 is the seed; x2 is operand 1
                compiler_params=cparams,
            )(seed_arr, x2, pe2)
        else:
            # pltpu.prng_seed has no CPU/interpret lowering -> host-generated bits.
            bits = jax.random.bits(jax.random.PRNGKey(seed), (A, BDp), dtype=jnp.uint32)
            out2 = pl.pallas_call(
                functools.partial(pe_add_dropout_bits_kernel,
                                  threshold=threshold, inv_keep=inv_keep),
                out_shape=out_shape,
                grid=grid,
                in_specs=[x_spec, pe_spec, x_spec],
                out_specs=x_spec,
                input_output_aliases={0: 0},
                compiler_params=cparams,
            )(x2, pe2, bits)

    if BDp != BD:
        out2 = out2[:, :BD]
    return out2.reshape(A, B, D)


# ----------------------------- main -----------------------------------------

if __name__ == "__main__":
    d_model = 32
    A = 8                       # x.size(0); original broadcasting requires dim1 == dim0
    key = jax.random.PRNGKey(0)
    x = jax.random.normal(key, (A, A, d_model), dtype=jnp.float32)

    pe_table = make_pe_table(d_model)                   # (16384, 32), deterministic

    # Reference computed up-front (x is never mutated: aliasing is copy-protected by
    # XLA for non-donated inputs, but keep the check order unambiguous anyway).
    ref = np.asarray(x) + np.asarray(pe_table[:A])[None, :, :]

    # Eval mode (dropout is identity) — exact check; force the Pallas path.
    out = positional_encoding_forward(x, pe_table, training=False, force_pallas=True)
    out = jax.block_until_ready(out)
    np.testing.assert_allclose(np.asarray(out), ref, rtol=1e-6, atol=1e-6)

    # Training mode (inverted dropout, p=0.1): kept entries must equal ref / (1-p).
    out_train = positional_encoding_forward(x, pe_table, training=True, seed=0,
                                            force_pallas=True)
    out_train = jax.block_until_ready(out_train)
    o = np.asarray(out_train)
    assert np.all(np.isfinite(o))
    scaled_ref = ref / (1.0 - DROPOUT)
    nz = o != 0.0
    np.testing.assert_allclose(o[nz], scaled_ref[nz], rtol=1e-5, atol=1e-5)
    assert 0.5 < nz.mean() <= 1.0          # roughly (1-p) of entries kept

    # Small-shape fused-XLA fallback (no pallas_call) matches in eval mode too.
    out_xla = jax.block_until_ready(positional_encoding_forward(x, pe_table, training=False))
    np.testing.assert_allclose(np.asarray(out_xla), ref, rtol=1e-6, atol=1e-6)

    print("KERNEL_OK")
</pallas_src>

<mosaic_0001>
module attributes {stable_mosaic.version = 11 : i64} {
  func.func @pe_add_kernel(%arg0: i32, %arg1: memref<8x256xf32, #tpu.memory_space<vmem>>, %arg2: memref<1x256xf32, #tpu.memory_space<vmem>>, %arg3: memref<8x256xf32, #tpu.memory_space<vmem>>) attributes {dimension_semantics = [#tpu.dimension_semantics<parallel>], iteration_bounds = array<i64: 1>, scalar_prefetch = 0 : i64, scratch_operands = 0 : i64, tpu.core_type = #tpu.core_type<tc>, window_params = [{transform_indices = @transform_0, window_bounds = array<i64: 8, 256>}, {pipeline_mode = #tpu.pipeline_mode<synchronous>, transform_indices = @transform_1, window_bounds = array<i64: 1, 256>}, {transform_indices = @transform_2, window_bounds = array<i64: 8, 256>}]} {
    %c0 = arith.constant 0 : index
    %c0_0 = arith.constant 0 : index
    %0 = vector.load %arg1[%c0, %c0_0] : memref<8x256xf32, #tpu.memory_space<vmem>>, vector<8x256xf32>
    %c0_1 = arith.constant 0 : index
    %c0_2 = arith.constant 0 : index
    %1 = vector.load %arg2[%c0_1, %c0_2] : memref<1x256xf32, #tpu.memory_space<vmem>>, vector<1x256xf32>
    %2 = vector.broadcast %1 : vector<1x256xf32> to vector<8x256xf32>
    %3 = arith.addf %0, %2 : vector<8x256xf32>
    %c0_3 = arith.constant 0 : index
    %c0_4 = arith.constant 0 : index
    %4 = vector.load %arg3[%c0_3, %c0_4] : memref<8x256xf32, #tpu.memory_space<vmem>>, vector<8x256xf32>
    tpu.vector_store %arg3[%c0_3, %c0_4], %3 {strides = array<i32>} : memref<8x256xf32, #tpu.memory_space<vmem>>, vector<8x256xf32>,
    return
  }
  func.func @transform_0(%arg0: i32) -> (i32, i32) {
    %c0_i32 = arith.constant 0 : i32
    %c0_i32_0 = arith.constant 0 : i32
    return %arg0, %c0_i32 : i32, i32
  }
  func.func @transform_1(%arg0: i32) -> (i32, i32) {
    %c0_i32 = arith.constant 0 : i32
    %c0_i32_0 = arith.constant 0 : i32
    %c0_i32_1 = arith.constant 0 : i32
    return %c0_i32, %c0_i32_0 : i32, i32
  }
  func.func @transform_2(%arg0: i32) -> (i32, i32) {
    %c0_i32 = arith.constant 0 : i32
    %c0_i32_0 = arith.constant 0 : i32
    return %arg0, %c0_i32 : i32, i32
  }
}

</mosaic_0001>

<bundles_post_ra>
// kernel: tpu_custom_call.1
= control target key start
LH: loop header
LB: loop body
LE: loop exit
PB: predicated region body
PF: predicated region fallthrough
CT: control target
= control target key end

     0   :  { %7 = vsyncpa [#allocation3], 0  ;;  %s151_s0 = inlined_call_operand.hbm [shape: f32[8,256], index: 0, kind: input, shape index: {}, may-alias: {0,2}]   ;;  %s152_s1 = inlined_call_operand.vmem [shape: f32[1,256], index: 1, kind: input, shape index: {}]   ;;  %s153_s2 = inlined_call_operand.hbm [shape: f32[8,256], index: 2, kind: output, shape index: {}, may-alias: {0,2}]  }
   0x1   :  { %8 = vsyncpa [#allocation4], 0  ;;  %s107_s9 = smov [#allocation2]   ;;  %s59_s13 = scalar_lea.hbm %s151_s0, 256 }
   0x2   :  { %s15_s10 = sshll.u32 %s107_s9, 4  ;;  %p60_p0 = scmp.ne.s32.totalorder %s151_s0, %s59_s13  ;;  %s16_s10 = int_to_ptr.vmem [resolvable:$true] %s15_s10 }
   0x3   :  { %p63_p1 = scmp.lt.u32.totalorder %s59_s13, %s151_s0 }
   0x5   :  { %p65_p2 = pnand %p63_p1, %p60_p0 }
   0x7   :  { %68 = shalt.err (!%p65_p2)
}
   0x8   :  { %s69_s18 = scalar_lea.vmem %s16_s10, 256  ;;  %p74_p4 = scmp.lt.s32.totalorder %s16_s10, %s16_s10 }
   0x9   :  { %p70_p3 = scmp.ne.s32.totalorder %s16_s10, %s69_s18  ;;  %p75_p5 = scmp.lt.s32.totalorder %s69_s18, %s69_s18 }
   0xb   :  { %p76_p6 = por %p75_p5, %p74_p4 }
   0xd   :  { %p77_p7 = pnand %p76_p6, %p70_p3 }
   0xf   :  { %80 = shalt.err (!%p77_p7)
}
  0x10   :  { %18 = dma.hbm_to_vmem [thread:$0]  %s151_s0, 256, %s16_s10, [#allocation3]  }
  0x11   :  { %103 = dma.done.wait [#allocation3], 256  }
  0x12   :  { %104 = vsyncadd [#allocation3], 4294967040  ;;  %v28_v0 = vlaneseq  ;;  %v24_v4 = vld [vmem:[#allocation2] sm:$0xff]  ;;  %v25_v6 = vld [vmem:[#allocation2 + $0x8] sm:$0xff]  ;;  %s108_s23 = smov [#allocation5]  }
  0x13   :  { %v26_v5 = vld [vmem:[%s152_s1] sm:$0x3]  ;;  %s48_s24 = sshll.u32 %s108_s23, 4  ;;  %s49_s24 = int_to_ptr.vmem [resolvable:$true] %s48_s24 }
  0x14   :  { %v29_v1 = vshrl.u32 %v28_v0, 7  ;;  %s81_s0 = scalar_lea.vmem %s49_s24, 256  ;;  %p86_p9 = scmp.lt.s32.totalorder %s49_s24, %s49_s24 }
  0x15   :  { %p82_p8 = scmp.ne.s32.totalorder %s49_s24, %s81_s0  ;;  %p87_p10 = scmp.lt.s32.totalorder %s81_s0, %s81_s0 }
  0x16   :  { %v30_v2 = vsub.s32 0, %v29_v1  ;;  %v34_v3 = vsub.s32 1, %v29_v1 }
  0x17   :  { %p88_p11 = por %p87_p10, %p86_p9 }
  0x18   :  { %v31_v7 = vrot.slane %v26_v5, %v30_v2  ;;  %v35_v8 = vrot.slane %v26_v5, %v34_v3 }
  0x19   :  { %p89_p12 = pnand %p88_p11, %p82_p8 }
  0x1a   :  { %v38_v9 = vadd.f32 %v31_v7, %v24_v4  ;;  %v39_v10 = vadd.f32 %v35_v8, %v25_v6 }
  0x1c   :  { %40 = vst [vmem:[#allocation5] sm:$0xff] %v38_v9  ;;  %41 = vst [vmem:[#allocation5 + $0x8] sm:$0xff] %v39_v10 }
  0x1d   :  { %92 = shalt.err (!%p89_p12)
}
  0x1e   :  { %s93_s1 = scalar_lea.hbm %s153_s2, 256 }
  0x1f   :  { %p94_p13 = scmp.ne.s32.totalorder %s153_s2, %s93_s1  ;;  %p97_p0 = scmp.lt.u32.totalorder %s93_s1, %s153_s2 }
  0x21   :  { %p99_p1 = pnand %p97_p0, %p94_p13 }
  0x23   :  { %102 = shalt.err (!%p99_p1)
}
  0x24   :  { %51 = dma.vmem_to_hbm [thread:$0]  %s49_s24, 256, %s153_s2, [#allocation4]  }
  0x25   :  { %105 = dma.done.wait [#allocation4], 256  }
  0x26   :  { %106 = vsyncadd [#allocation4], 4294967040 }
  0x27   :  { %55 = vsyncpa [#allocation3], 1 }
  0x28   :  { %56 = vsyncpa [#allocation4], 1 }

</bundles_post_ra>
